<compile_context>
chip_gen: v7x
topology: tpu7x:2x2x1
jax: 0.10.0
libtpu: 0.0.40
codegen_flags: <defaults>
</compile_context>

<pallas_src>
import functools

import jax
import jax.numpy as jnp
from jax import lax
from jax.experimental import pallas as pl
from jax.experimental.pallas import tpu as pltpu

LANES = 128
MAX_ROW_BLOCK = 1024  # (1024, 128) f32 tile = 512 KiB per input per buffer.


def _loss_kernel(yp_ref, yt_ref, out_ref, acc_ref, *, a, neg_factor,
                 under_factor, inv_n, rows_valid, row_block, steps_per_split):
    s = pl.program_id(0)   # "parallel" split (megacore-shardable on v7x)
    i = pl.program_id(1)   # "arbitrary" reduction axis within the split

    @pl.when(i == 0)
    def _():
        acc_ref[...] = jnp.zeros_like(acc_ref)

    # Cast per-tile in VMEM; inputs stream from HBM in their native dtype.
    yp = yp_ref[...].astype(jnp.float32)
    yt = yt_ref[...].astype(jnp.float32)

    diff = yp - yt                       # |yp - yt|^2 == (yp - yt)^2
    mse = diff * diff
    le = jnp.log((jnp.abs(yp) + 1.0) / (yt + 1.0))
    le = le * le

    loss = 100.0 * (a * le + mse)
    weighted = (loss
                * jnp.where(yp < 0.0, neg_factor, 1.0)
                * jnp.where(yp < yt, under_factor, 1.0))

    # Mask rows that fall outside the logical array (partial last block and
    # clamped duplicate blocks).  Uses the *unclamped* global block index.
    gi = s * steps_per_split + i
    row_ids = gi * row_block + lax.broadcasted_iota(jnp.int32, weighted.shape, 0)
    weighted = jnp.where(row_ids < rows_valid, weighted, 0.0)

    # Vector-shaped accumulation: pure elementwise VALU adds per step.
    acc_ref[...] = acc_ref[...] + weighted

    @pl.when(i == pl.num_programs(1) - 1)
    def _():
        out_ref[...] = (jnp.sum(acc_ref[...]) * inv_n).reshape(1, 1, 1)


def log_mse_penalize_loss(y_pred, y_true, a=10.0, neg_factor=2.0,
                          under_factor=2.0):
    assert y_pred.shape == y_true.shape
    n_elem = int(y_pred.size)
    assert n_elem > 0

    # Flatten (metadata-only for contiguous inputs); keep native dtype.
    yp = jnp.ravel(y_pred)
    yt = jnp.ravel(y_true)

    # Lane-align to 128 only if needed (<=127 zeros; zeros contribute exactly
    # 0 to the weighted sum, the divisor uses the true element count).
    if n_elem % LANES:
        pad = LANES - n_elem % LANES
        yp = jnp.pad(yp, (0, pad))
        yt = jnp.pad(yt, (0, pad))
    rows = pl.cdiv(n_elem, LANES)
    yp2d = yp.reshape(rows, LANES)
    yt2d = yt.reshape(rows, LANES)

    # Biggest tile that fits comfortably in scoped VMEM on every generation.
    if rows <= MAX_ROW_BLOCK:
        row_block = rows                 # full-extent block (always legal)
    else:
        row_block = MAX_ROW_BLOCK        # multiple of 8 sublanes
    total_blocks = pl.cdiv(rows, row_block)

    # 2 independent partials along a leading "parallel" axis (v7x megacore).
    n_split = 2 if total_blocks >= 2 else 1
    steps_per_split = pl.cdiv(total_blocks, n_split)
    last_block = total_blocks - 1

    def in_index_map(s, i):
        # Clamp duplicated trailing blocks; the kernel masks them to zero.
        return (jnp.minimum(s * steps_per_split + i, last_block), 0)

    kernel = functools.partial(
        _loss_kernel,
        a=float(a),
        neg_factor=float(neg_factor),
        under_factor=float(under_factor),
        inv_n=1.0 / float(n_elem),
        rows_valid=rows,
        row_block=row_block,
        steps_per_split=steps_per_split,
    )

    partials = pl.pallas_call(
        kernel,
        out_shape=jax.ShapeDtypeStruct((n_split, 1, 1), jnp.float32),
        grid_spec=pltpu.PrefetchScalarGridSpec(
            num_scalar_prefetch=0,
            grid=(n_split, steps_per_split),
            in_specs=[
                pl.BlockSpec((row_block, LANES), in_index_map),
                pl.BlockSpec((row_block, LANES), in_index_map),
            ],
            out_specs=pl.BlockSpec((1, 1, 1), lambda s, i: (s, 0, 0)),
            scratch_shapes=[pltpu.VMEM((row_block, LANES), jnp.float32)],
        ),
        compiler_params=pltpu.CompilerParams(
            dimension_semantics=("parallel", "arbitrary")),
    )(yp2d, yt2d)
    return jnp.sum(partials)


def _reference(y_pred, y_true, a=10.0, neg_factor=2.0, under_factor=2.0):
    yp = y_pred.astype(jnp.float32)
    yt = y_true.astype(jnp.float32)
    mse = jnp.abs(yp - yt) ** 2
    le = jnp.log((jnp.abs(yp) + 1.0) / (yt + 1.0)) ** 2
    neg = (yp < 0.0).astype(jnp.float32)
    under = (yp < yt).astype(jnp.float32)
    loss = 100.0 * (a * le + mse)
    w = loss * (1.0 + (neg_factor - 1.0) * neg) * (1.0 + (under_factor - 1.0) * under)
    return jnp.mean(w)


if __name__ == "__main__":
    key = jax.random.PRNGKey(0)
    k1, k2, k3, k4 = jax.random.split(key, 4)

    # Primary small NCHW example (loss is elementwise + mean, shape-agnostic).
    # Keep y_true > -1 so log((|yp|+1)/(yt+1)) is well defined, as in practice.
    y_pred = jax.random.normal(k1, (2, 4, 16, 16), dtype=jnp.float32)
    y_true = jax.random.uniform(k2, (2, 4, 16, 16), dtype=jnp.float32,
                                minval=0.0, maxval=2.0)
    out = jax.block_until_ready(log_mse_penalize_loss(y_pred, y_true))
    ref = _reference(y_pred, y_true)
    assert jnp.allclose(out, ref, rtol=1e-4, atol=1e-4), (out, ref)

    # Secondary check: non-lane-aligned size, partial-last-block masking and
    # the 2-way parallel split path.
    y_pred2 = jax.random.normal(k3, (2, 4, 131, 129), dtype=jnp.float32)
    y_true2 = jax.random.uniform(k4, (2, 4, 131, 129), dtype=jnp.float32,
                                 minval=0.0, maxval=2.0)
    out2 = jax.block_until_ready(log_mse_penalize_loss(y_pred2, y_true2))
    ref2 = _reference(y_pred2, y_true2)
    assert jnp.allclose(out2, ref2, rtol=1e-4, atol=1e-4), (out2, ref2)

    print("KERNEL_OK")
</pallas_src>

<mosaic_0001>
module attributes {stable_mosaic.version = 11 : i64} {
  func.func @_loss_kernel(%arg0: i32, %arg1: i32, %arg2: memref<16x128xf32, #tpu.memory_space<vmem>>, %arg3: memref<16x128xf32, #tpu.memory_space<vmem>>, %arg4: memref<1x1x1xf32, #tpu.memory_space<vmem>>, %arg5: memref<16x128xf32, #tpu.memory_space<vmem>>) attributes {dimension_semantics = [#tpu.dimension_semantics<parallel>, #tpu.dimension_semantics<arbitrary>], iteration_bounds = array<i64: 1, 1>, scalar_prefetch = 0 : i64, scratch_operands = 1 : i64, tpu.core_type = #tpu.core_type<tc>, window_params = [{transform_indices = @transform_0, window_bounds = array<i64: 16, 128>}, {transform_indices = @transform_1, window_bounds = array<i64: 16, 128>}, {transform_indices = @transform_2, window_bounds = array<i64: 1, 1, 1>}]} {
    %c0_i32 = arith.constant 0 : i32
    %0 = arith.cmpi eq, %arg1, %c0_i32 : i32
    %1 = arith.extui %0 : i1 to i32
    %c0_i32_0 = arith.constant 0 : i32
    %2 = arith.cmpi ne, %1, %c0_i32_0 : i32
    scf.if %2 {
      %cst_20 = arith.constant 0.000000e+00 : f32
      %47 = vector.broadcast %cst_20 : f32 to vector<16x128xf32>
      %c0_21 = arith.constant 0 : index
      %c0_22 = arith.constant 0 : index
      %48 = vector.load %arg5[%c0_21, %c0_22] : memref<16x128xf32, #tpu.memory_space<vmem>>, vector<16x128xf32>
      tpu.vector_store %arg5[%c0_21, %c0_22], %47 {strides = array<i32>} : memref<16x128xf32, #tpu.memory_space<vmem>>, vector<16x128xf32>,
    } else {
    }
    %c0 = arith.constant 0 : index
    %c0_1 = arith.constant 0 : index
    %3 = vector.load %arg2[%c0, %c0_1] : memref<16x128xf32, #tpu.memory_space<vmem>>, vector<16x128xf32>
    %c0_2 = arith.constant 0 : index
    %c0_3 = arith.constant 0 : index
    %4 = vector.load %arg3[%c0_2, %c0_3] : memref<16x128xf32, #tpu.memory_space<vmem>>, vector<16x128xf32>
    %5 = arith.subf %3, %4 : vector<16x128xf32>
    %6 = arith.mulf %5, %5 : vector<16x128xf32>
    %7 = math.absf %3 : vector<16x128xf32>
    %cst = arith.constant 1.000000e+00 : f32
    %8 = vector.broadcast %cst : f32 to vector<16x128xf32>
    %9 = arith.addf %7, %8 : vector<16x128xf32>
    %cst_4 = arith.constant 1.000000e+00 : f32
    %10 = vector.broadcast %cst_4 : f32 to vector<16x128xf32>
    %11 = arith.addf %4, %10 : vector<16x128xf32>
    %12 = arith.divf %9, %11 : vector<16x128xf32>
    %13 = math.log %12 : vector<16x128xf32>
    %14 = arith.mulf %13, %13 : vector<16x128xf32>
    %cst_5 = arith.constant 1.000000e+01 : f32
    %15 = vector.broadcast %cst_5 : f32 to vector<16x128xf32>
    %16 = arith.mulf %15, %14 : vector<16x128xf32>
    %17 = arith.addf %16, %6 : vector<16x128xf32>
    %cst_6 = arith.constant 1.000000e+02 : f32
    %18 = vector.broadcast %cst_6 : f32 to vector<16x128xf32>
    %19 = arith.mulf %18, %17 : vector<16x128xf32>
    %cst_7 = arith.constant 0.000000e+00 : f32
    %20 = vector.broadcast %cst_7 : f32 to vector<16x128xf32>
    %21 = arith.cmpf olt, %3, %20 : vector<16x128xf32>
    %cst_8 = arith.constant 2.000000e+00 : f32
    %cst_9 = arith.constant 1.000000e+00 : f32
    %22 = vector.broadcast %cst_8 : f32 to vector<16x128xf32>
    %23 = vector.broadcast %cst_9 : f32 to vector<16x128xf32>
    %24 = arith.select %21, %22, %23 : vector<16x128xi1>, vector<16x128xf32>
    %25 = arith.mulf %19, %24 : vector<16x128xf32>
    %26 = arith.cmpf olt, %3, %4 : vector<16x128xf32>
    %cst_10 = arith.constant 2.000000e+00 : f32
    %cst_11 = arith.constant 1.000000e+00 : f32
    %27 = vector.broadcast %cst_10 : f32 to vector<16x128xf32>
    %28 = vector.broadcast %cst_11 : f32 to vector<16x128xf32>
    %29 = arith.select %26, %27, %28 : vector<16x128xi1>, vector<16x128xf32>
    %30 = arith.mulf %25, %29 : vector<16x128xf32>
    %c1_i32 = arith.constant 1 : i32
    %31 = arith.muli %arg0, %c1_i32 : i32
    %32 = arith.addi %31, %arg1 : i32
    %c16_i32 = arith.constant 16 : i32
    %33 = arith.muli %32, %c16_i32 : i32
    %34 = tpu.iota {dimensions = array<i32: 0>} : vector<16x128xi32>
    %35 = vector.broadcast %33 : i32 to vector<16x128xi32>
    %36 = arith.addi %35, %34 : vector<16x128xi32>
    %c16_i32_12 = arith.constant 16 : i32
    %37 = vector.broadcast %c16_i32_12 : i32 to vector<16x128xi32>
    %38 = arith.cmpi slt, %36, %37 : vector<16x128xi32>
    %cst_13 = arith.constant 0.000000e+00 : f32
    %39 = vector.broadcast %cst_13 : f32 to vector<16x128xf32>
    %40 = arith.select %38, %30, %39 : vector<16x128xi1>, vector<16x128xf32>
    %c0_14 = arith.constant 0 : index
    %c0_15 = arith.constant 0 : index
    %41 = vector.load %arg5[%c0_14, %c0_15] : memref<16x128xf32, #tpu.memory_space<vmem>>, vector<16x128xf32>
    %42 = arith.addf %41, %40 : vector<16x128xf32>
    %c0_16 = arith.constant 0 : index
    %c0_17 = arith.constant 0 : index
    %43 = vector.load %arg5[%c0_16, %c0_17] : memref<16x128xf32, #tpu.memory_space<vmem>>, vector<16x128xf32>
    tpu.vector_store %arg5[%c0_16, %c0_17], %42 {strides = array<i32>} : memref<16x128xf32, #tpu.memory_space<vmem>>, vector<16x128xf32>,
    %c0_i32_18 = arith.constant 0 : i32
    %44 = arith.cmpi eq, %arg1, %c0_i32_18 : i32
    %45 = arith.extui %44 : i1 to i32
    %c0_i32_19 = arith.constant 0 : i32
    %46 = arith.cmpi ne, %45, %c0_i32_19 : i32
    scf.if %46 {
      %c0_20 = arith.constant 0 : index
      %c0_21 = arith.constant 0 : index
      %47 = vector.load %arg5[%c0_20, %c0_21] : memref<16x128xf32, #tpu.memory_space<vmem>>, vector<16x128xf32>
      %48 = vector.shape_cast %47 : vector<16x128xf32> to vector<1x16x128xf32>
      %cst_22 = arith.constant dense<0.000000e+00> : vector<1xf32>
      %49 = vector.multi_reduction <add>, %48, %cst_22 [1, 2] : vector<1x16x128xf32> to vector<1xf32>
      %50 = vector.shape_cast %49 : vector<1xf32> to vector<1x1x1xf32>
      %51 = vector.extract %50[0, 0, 0] : f32 from vector<1x1x1xf32>
      %cst_23 = arith.constant 4.8828125E-4 : f32
      %52 = arith.mulf %51, %cst_23 : f32
      %53 = vector.broadcast %52 : f32 to vector<1x1x1xf32>
      %c0_24 = arith.constant 0 : index
      %c0_25 = arith.constant 0 : index
      %c0_26 = arith.constant 0 : index
      %54 = vector.load %arg4[%c0_24, %c0_25, %c0_26] : memref<1x1x1xf32, #tpu.memory_space<vmem>>, vector<1x1x1xf32>
      tpu.vector_store %arg4[%c0_24, %c0_25, %c0_26], %53 {strides = array<i32>} : memref<1x1x1xf32, #tpu.memory_space<vmem>>, vector<1x1x1xf32>,
    } else {
    }
    return
  }
  func.func @transform_0(%arg0: i32, %arg1: i32) -> (i32, i32) {
    %c1_i32 = arith.constant 1 : i32
    %0 = arith.muli %arg0, %c1_i32 : i32
    %1 = arith.addi %0, %arg1 : i32
    %c0_i32 = arith.constant 0 : i32
    %2 = arith.minsi %1, %c0_i32 : i32
    %c0_i32_0 = arith.constant 0 : i32
    %c0_i32_1 = arith.constant 0 : i32
    return %2, %c0_i32_0 : i32, i32
  }
  func.func @transform_1(%arg0: i32, %arg1: i32) -> (i32, i32) {
    %c1_i32 = arith.constant 1 : i32
    %0 = arith.muli %arg0, %c1_i32 : i32
    %1 = arith.addi %0, %arg1 : i32
    %c0_i32 = arith.constant 0 : i32
    %2 = arith.minsi %1, %c0_i32 : i32
    %c0_i32_0 = arith.constant 0 : i32
    %c0_i32_1 = arith.constant 0 : i32
    return %2, %c0_i32_0 : i32, i32
  }
  func.func @transform_2(%arg0: i32, %arg1: i32) -> (i32, i32, i32) {
    %c0_i32 = arith.constant 0 : i32
    %c0_i32_0 = arith.constant 0 : i32
    %c0_i32_1 = arith.constant 0 : i32
    return %arg0, %c0_i32, %c0_i32_0 : i32, i32, i32
  }
}

</mosaic_0001>

<bundles_post_ra>
// kernel: tpu_custom_call.1
= control target key start
LH: loop header
LB: loop body
LE: loop exit
PB: predicated region body
PF: predicated region fallthrough
CT: control target
= control target key end

     0   :  { %7 = vsyncpa [#allocation4], 0  ;;  %s310_s0 = inlined_call_operand.hbm [shape: f32[16,128], index: 0, kind: input, shape index: {}]   ;;  %s311_s1 = inlined_call_operand.hbm [shape: f32[16,128], index: 1, kind: input, shape index: {}]   ;;  %s312_s2 = inlined_call_operand.hbm [shape: f32[1,1,1], index: 2, kind: output, shape index: {}]  }
   0x1   :  { %8 = vsyncpa [#allocation7], 0 }
   0x2   :  { %9 = vsyncpa [#allocation5], 0  ;;  %s253_s9 = smov [#allocation3]   ;;  %s181_s13 = scalar_lea.hbm %s310_s0, 256 }
   0x3   :  { %s21_s10 = sshll.u32 %s253_s9, 4  ;;  %p182_p0 = scmp.ne.s32.totalorder %s310_s0, %s181_s13  ;;  %s22_s10 = int_to_ptr.vmem [resolvable:$true] %s21_s10 }
   0x4   :  { %p185_p1 = scmp.lt.u32.totalorder %s181_s13, %s310_s0 }
   0x6   :  { %p187_p2 = pnand %p185_p1, %p182_p0 }
   0x8   :  { %190 = shalt.err (!%p187_p2)
}
   0x9   :  { %s191_s18 = scalar_lea.vmem %s22_s10, 256  ;;  %p196_p4 = scmp.lt.s32.totalorder %s22_s10, %s22_s10 }
   0xa   :  { %p192_p3 = scmp.ne.s32.totalorder %s22_s10, %s191_s18  ;;  %p197_p5 = scmp.lt.s32.totalorder %s191_s18, %s191_s18 }
   0xc   :  { %p198_p6 = por %p197_p5, %p196_p4 }
   0xe   :  { %p199_p7 = pnand %p198_p6, %p192_p3 }
  0x10   :  { %202 = shalt.err (!%p199_p7)
}
  0x11   :  { %s254_s19 = smov 128   ;;  %s255_s20 = smov 8  }
  0x12   :  { %27 = dma.hbm_to_vmem [thread:$0]  %s310_s0, 256, %s22_s10, [#allocation4], %s254_s19, %s254_s19, %s255_s20  }
  0x13   :  { %s256_s23 = smov [#allocation6]   ;;  %s203_s27 = scalar_lea.hbm %s311_s1, 256 }
  0x14   :  { %s39_s24 = sshll.u32 %s256_s23, 4  ;;  %p204_p8 = scmp.ne.s32.totalorder %s311_s1, %s203_s27  ;;  %s40_s24 = int_to_ptr.vmem [resolvable:$true] %s39_s24 }
  0x15   :  { %p207_p9 = scmp.lt.u32.totalorder %s203_s27, %s311_s1 }
  0x17   :  { %p209_p10 = pnand %p207_p9, %p204_p8 }
  0x19   :  { %212 = shalt.err (!%p209_p10)
}
  0x1a   :  { %s213_s4 = scalar_lea.vmem %s40_s24, 256  ;;  %p218_p12 = scmp.lt.s32.totalorder %s40_s24, %s40_s24 }
  0x1b   :  { %p214_p11 = scmp.ne.s32.totalorder %s40_s24, %s213_s4  ;;  %p219_p13 = scmp.lt.s32.totalorder %s213_s4, %s213_s4 }
  0x1d   :  { %p220_p0 = por %p219_p13, %p218_p12 }
  0x1f   :  { %p221_p1 = pnand %p220_p0, %p214_p11 }
  0x21   :  { %224 = shalt.err (!%p221_p1)
}
  0x22   :  { %45 = dma.hbm_to_vmem [thread:$0]  %s311_s1, 256, %s40_s24, [#allocation7], %s254_s19, %s254_s19, %s255_s20  }
  0x23   :  { %247 = dma.done.wait [#allocation4], 256  }
  0x24   :  { %248 = vsyncadd [#allocation4], 4294967040 }
  0x25   :  { %249 = dma.done.wait [#allocation7], 256  }
  0x26   :  { %250 = vsyncadd [#allocation7], 4294967040  ;;  %v68_v0 = vld [vmem:[#allocation6] sm:$0xff]  ;;  %v69_v1 = vld [vmem:[#allocation6 + $0x8] sm:$0xff]  ;;  %v257_v28 = vmov 1.0   ;;  %s258_s1 = smov [#allocation8]  }
  0x27   :  { %v78_v2 = vadd.f32 1.0, %v68_v0  ;;  %v79_v3 = vadd.f32 1.0, %v69_v1  ;;  %v66_v4 = vld [vmem:[#allocation3] sm:$0xff]  ;;  %v67_v5 = vld [vmem:[#allocation3 + $0x8] sm:$0xff]  ;;  %s151_s6 = sshll.u32 %s258_s1, 4  ;;  %vm143_vm4 = vcmask 0   ;;  %s152_s6 = int_to_ptr.vmem [resolvable:$true] %s151_s6 }
  0x28   :  { %v74_v6 = vand.u32 2147483647, %v66_v4  ;;  %v75_v7 = vand.u32 2147483647, %v67_v5  ;;  %v70_v14 = vsub.f32 %v66_v4, %v68_v0  ;;  %v71_v16 = vsub.f32 %v67_v5, %v69_v1  ;;  %s225_s9 = scalar_lea.vmem %s152_s6, 16  ;;  %s229_s10 = scalar_lea.vmem %s152_s6, 32 }
  0x29   :  { %173 = vrcp.f32 %v78_v2  ;;  %vm96_vm0 = vcmp.lt.f32.partialorder %v66_v4, 0.0  ;;  %vm97_vm1 = vcmp.lt.f32.partialorder %v67_v5, 0.0  ;;  %vm102_vm2 = vcmp.lt.f32.partialorder %v66_v4, %v68_v0  ;;  %p226_p2 = scmp.ne.s32.totalorder %s152_s6, %s225_s9  ;;  %p230_p3 = scmp.lt.s32.totalorder %s152_s6, %s152_s6 }
  0x2a   :  { %175 = vrcp.f32 %v79_v3  ;;  %v76_v8 = vadd.f32 1.0, %v74_v6  ;;  %v77_v9 = vadd.f32 1.0, %v75_v7  ;;  %v72_v20 = vmul.f32 %v70_v14, %v70_v14  ;;  %p231_p4 = scmp.lt.s32.totalorder %s229_s10, %s225_s9 }
  0x2b   :  { %v73_v22 = vmul.f32 %v71_v16, %v71_v16  ;;  %v98_v29 = vsel %vm96_vm0, 2.0, %v257_v28  ;;  %vm103_vm3 = vcmp.lt.f32.partialorder %v67_v5, %v69_v1  ;;  %v99_v31 = vsel %vm97_vm1, 2.0, %v257_v28 }
  0x2c   :  { %v104_v33 = vsel %vm102_vm2, 2.0, %v257_v28  ;;  %v105_v35 = vsel %vm103_vm3, 2.0, %v257_v28  ;;  %p232_p5 = por %p231_p4, %p230_p3 }
  0x2e   :  { %p233_p6 = pnand %p232_p5, %p226_p2 }
  0x33   :  { %v174_v10 = vpop.eup %173 }
  0x34   :  { %v176_v11 = vpop.eup %175  ;;  %v81_v12 = vmul.f32 %v174_v10, %v76_v8 }
  0x35   :  { %v83_v13 = vmul.f32 %v176_v11, %v77_v9 }
  0x36   :  { %177 = vlog2.f32 %v81_v12 }
  0x37   :  { %179 = vlog2.f32 %v83_v13 }
  0x40   :  { %v178_v15 = vpop.eup %177 }
  0x41   :  { %v180_v17 = vpop.eup %179  ;;  %v85_v18 = vmul.f32 0.6931472, %v178_v15 }
  0x42   :  { %v87_v19 = vmul.f32 0.6931472, %v180_v17 }
  0x43   :  { %v88_v21 = vmul.f32 %v85_v18, %v85_v18 }
  0x44   :  { %v89_v23 = vmul.f32 %v87_v19, %v87_v19 }
  0x45   :  { %v90_v24 = vmul.f32 10.0, %v88_v21 }
  0x46   :  { %v91_v25 = vmul.f32 10.0, %v89_v23 }
  0x47   :  { %v92_v26 = vadd.f32 %v90_v24, %v72_v20 }
  0x48   :  { %v93_v27 = vadd.f32 %v91_v25, %v73_v22 }
  0x49   :  { %v94_v30 = vmul.f32 100.0, %v92_v26 }
  0x4a   :  { %v95_v32 = vmul.f32 100.0, %v93_v27 }
  0x4b   :  { %v100_v34 = vmul.f32 %v98_v29, %v94_v30 }
  0x4c   :  { %v101_v36 = vmul.f32 %v99_v31, %v95_v32 }
  0x4d   :  { %v106_v37 = vmul.f32 %v104_v33, %v100_v34 }
  0x4e   :  { %v107_v38 = vmul.f32 %v105_v35, %v101_v36 }
  0x50   :  { %v131_v39 = vadd.f32 %v107_v38, %v106_v37 }
  0x52   :  { %132 = vadd.xlane.f32.xlu0 %v131_v39 }
  0xdf   :  { %v133_v40 = vpop.xlane.xlu0 %132 }
  0xe0   :  { %v134_v41 = vrot.slane %v133_v40, 4 }
  0xe2   :  { %v135_v42 = vadd.f32 %v134_v41, %v133_v40 }
  0xe4   :  { %v136_v43 = vrot.slane %v135_v42, 2 }
  0xe6   :  { %v137_v44 = vadd.f32 %v136_v43, %v135_v42 }
  0xe8   :  { %v138_v45 = vrot.slane %v137_v44, 1 }
  0xea   :  { %v139_v46 = vadd.f32 %v138_v45, %v137_v44 }
  0xec   :  { %165 = vpush %v139_v46 }
 0x11d   :  { %s166_s7 = spop %165 }
 0x11e   :  { %s141_s8 = smul.f32 0.00048828125, %s166_s7 }
 0x120   :  { %v142_v47 = vstv %s141_s8 }
 0x121   :  { %144 = vst.msk [vmem:[#allocation8] sm:$0x1] %vm143_vm4, %v142_v47 }
 0x122   :  { %236 = shalt.err (!%p233_p6)
}
 0x123   :  { %s237_s13 = scalar_lea.hbm %s312_s2, 16 }
 0x124   :  { %p238_p7 = scmp.ne.s32.totalorder %s312_s2, %s237_s13  ;;  %p241_p8 = scmp.lt.u32.totalorder %s237_s13, %s312_s2 }
 0x126   :  { %p243_p9 = pnand %p241_p8, %p238_p7 }
 0x128   :  { %246 = shalt.err (!%p243_p9)
}
 0x129   :  { %154 = dma.vmem_to_hbm [thread:$0]  %s152_s6, 16, %s312_s2, [#allocation5]  }
 0x12a   :  { %251 = dma.done.wait [#allocation5], 16  }
 0x12b   :  { %252 = vsyncadd [#allocation5], 4294967280 }
 0x12c   :  { %158 = vsyncpa [#allocation4], 1 }
 0x12d   :  { %159 = vsyncpa [#allocation7], 1 }
 0x12e   :  { %160 = vsyncpa [#allocation5], 1 }

</bundles_post_ra>
